<compile_context>
chip_gen: v7x
topology: tpu7x:2x2x1
jax: 0.10.0
libtpu: 0.0.40
codegen_flags: <defaults>
</compile_context>

<pallas_src>
import math
import jax
import jax.numpy as jnp
from jax.experimental import pallas as pl
from jax.experimental.pallas import tpu as pltpu


def _round_up(x, m):
    return ((x + m - 1) // m) * m


def _ac_fused_kernel(x_ref, w1_ref, w2_ref, b_ref, out_ref):
    two_h = w1_ref.shape[1]  # static (= 2 * hidden_dim = 128)
    # Layer 1 (actor || critic fused): one MXU matmul + broadcast bias add + ReLU.
    h = jnp.dot(x_ref[...], w1_ref[...], preferred_element_type=jnp.float32)
    h = jnp.maximum(h + b_ref[0:1, :two_h], 0.0)
    # Layer 2: block-diagonal fused matmul + bias -> lane-dense [TB, out_pad] store.
    out_ref[...] = (
        jnp.dot(h, w2_ref[...], preferred_element_type=jnp.float32) + b_ref[1:2, :]
    ).astype(out_ref.dtype)


def pack_fused_params(params, obs_dim, action_dim, hidden_dim):
    """Packs per-head params into fused kernel operands (do once, reuse per call)."""
    two_h = 2 * hidden_dim
    out_pad = max(two_h, _round_up(action_dim + 1, 128))

    # W1: [obs_dim, 2H]  (actor hidden || critic hidden).
    w1 = jnp.concatenate([params["aw1"], params["cw1"]], axis=1).astype(jnp.float32)

    # W2: block-diagonal [2H, out_pad].
    w2 = jnp.zeros((two_h, out_pad), jnp.float32)
    w2 = w2.at[:hidden_dim, :action_dim].set(params["aw2"])
    w2 = w2.at[hidden_dim:, action_dim:action_dim + 1].set(params["cw2"])

    # Fused bias operand [2, out_pad]: row 0 = layer-1 bias (first 2H lanes),
    # row 1 = layer-2 bias (actor logits cols + critic value col).
    b1 = jnp.concatenate([params["ab1"], params["cb1"]], axis=1).astype(jnp.float32)
    b = jnp.zeros((2, out_pad), jnp.float32)
    b = b.at[0:1, :two_h].set(b1)
    b = b.at[1, :action_dim].set(params["ab2"][0])
    b = b.at[1, action_dim].set(params["cb2"][0, 0])
    return w1, w2, b, out_pad


def ac_model_forward(obs, params, memory=None, *, block_b=512):
    """ACModel.forward(obs, memory) -> (logits, state_value, memory) via one Pallas call.

    obs:    [B, obs_dim] float
    params: dict with actor/critic weights in (in, out) layout and (1, out) biases.
    """
    B, obs_dim = obs.shape
    hidden_dim = params["aw1"].shape[1]
    action_dim = params["aw2"].shape[1]

    w1, w2, b, out_pad = pack_fused_params(params, obs_dim, action_dim, hidden_dim)

    x = obs.astype(jnp.float32)

    # Batch tiling: one block for small B; 'parallel' grid over row tiles for large B
    # (lets Mosaic shard rows across both v7x TensorCores; tiles sized well under
    # v7x's 64 MiB VMEM).
    tb = min(block_b, _round_up(B, 8))
    b_pad = _round_up(B, tb)
    if b_pad != B:
        x = jnp.pad(x, ((0, b_pad - B), (0, 0)))
    num_blocks = b_pad // tb

    out = pl.pallas_call(
        _ac_fused_kernel,
        out_shape=jax.ShapeDtypeStruct((b_pad, out_pad), jnp.float32),
        grid=(num_blocks,),
        in_specs=[
            pl.BlockSpec((tb, obs_dim), lambda i: (i, 0)),
            pl.BlockSpec(w1.shape, lambda i: (0, 0)),   # VMEM-resident across tiles
            pl.BlockSpec(w2.shape, lambda i: (0, 0)),
            pl.BlockSpec(b.shape, lambda i: (0, 0)),
        ],
        out_specs=pl.BlockSpec((tb, out_pad), lambda i: (i, 0)),
        compiler_params=pltpu.CompilerParams(
            dimension_semantics=("parallel",),
        ),
    )(x, w1, w2, b)

    logits = out[:B, :action_dim]
    state_value = out[:B, action_dim:action_dim + 1]
    return logits, state_value, memory


def init_params(key, obs_dim, action_dim, hidden_dim=64):
    """Deterministic PyTorch-Linear-style init: U(-1/sqrt(fan_in), 1/sqrt(fan_in))."""
    def linear(k, fan_in, fan_out):
        kw, kb = jax.random.split(k)
        bound = 1.0 / math.sqrt(fan_in)
        w = jax.random.uniform(kw, (fan_in, fan_out), jnp.float32, -bound, bound)
        bb = jax.random.uniform(kb, (1, fan_out), jnp.float32, -bound, bound)
        return w, bb

    k1, k2, k3, k4 = jax.random.split(key, 4)
    aw1, ab1 = linear(k1, obs_dim, hidden_dim)
    aw2, ab2 = linear(k2, hidden_dim, action_dim)
    cw1, cb1 = linear(k3, obs_dim, hidden_dim)
    cw2, cb2 = linear(k4, hidden_dim, 1)
    return dict(aw1=aw1, ab1=ab1, aw2=aw2, ab2=ab2,
                cw1=cw1, cb1=cb1, cw2=cw2, cb2=cb2)


def _reference_forward(obs, p):
    """Pure-JAX reference of the same math (for a sanity check)."""
    h_a = jnp.maximum(obs @ p["aw1"] + p["ab1"], 0.0)
    logits = h_a @ p["aw2"] + p["ab2"]
    h_c = jnp.maximum(obs @ p["cw1"] + p["cb1"], 0.0)
    value = h_c @ p["cw2"] + p["cb2"]
    return logits, value


if __name__ == "__main__":
    obs_dim, action_dim, hidden_dim = 32, 8, 64
    batch = 8

    key = jax.random.PRNGKey(0)
    k_obs, k_params = jax.random.split(key)
    obs = jax.random.normal(k_obs, (batch, obs_dim), jnp.float32)
    params = init_params(k_params, obs_dim, action_dim, hidden_dim)

    logits, state_value, memory = ac_model_forward(obs, params, memory=None)
    jax.block_until_ready((logits, state_value))

    ref_logits, ref_value = _reference_forward(obs, params)
    assert logits.shape == (batch, action_dim)
    assert state_value.shape == (batch, 1)
    assert jnp.allclose(logits, ref_logits, atol=1e-4, rtol=1e-4)
    assert jnp.allclose(state_value, ref_value, atol=1e-4, rtol=1e-4)
    assert memory is None

    print("KERNEL_OK")
</pallas_src>

<mosaic_0001>
module attributes {stable_mosaic.version = 11 : i64} {
  func.func @_ac_fused_kernel(%arg0: i32, %arg1: memref<8x32xf32, #tpu.memory_space<vmem>>, %arg2: memref<32x128xf32, #tpu.memory_space<vmem>>, %arg3: memref<128x128xf32, #tpu.memory_space<vmem>>, %arg4: memref<2x128xf32, #tpu.memory_space<vmem>>, %arg5: memref<8x128xf32, #tpu.memory_space<vmem>>) attributes {dimension_semantics = [#tpu.dimension_semantics<parallel>], iteration_bounds = array<i64: 1>, scalar_prefetch = 0 : i64, scratch_operands = 0 : i64, tpu.core_type = #tpu.core_type<tc>, window_params = [{transform_indices = @transform_0, window_bounds = array<i64: 8, 32>}, {pipeline_mode = #tpu.pipeline_mode<synchronous>, transform_indices = @transform_1, window_bounds = array<i64: 32, 128>}, {pipeline_mode = #tpu.pipeline_mode<synchronous>, transform_indices = @transform_2, window_bounds = array<i64: 128, 128>}, {pipeline_mode = #tpu.pipeline_mode<synchronous>, transform_indices = @transform_3, window_bounds = array<i64: 2, 128>}, {transform_indices = @transform_4, window_bounds = array<i64: 8, 128>}]} {
    %c0 = arith.constant 0 : index
    %c0_0 = arith.constant 0 : index
    %0 = vector.load %arg1[%c0, %c0_0] : memref<8x32xf32, #tpu.memory_space<vmem>>, vector<8x32xf32>
    %c0_1 = arith.constant 0 : index
    %c0_2 = arith.constant 0 : index
    %1 = vector.load %arg2[%c0_1, %c0_2] : memref<32x128xf32, #tpu.memory_space<vmem>>, vector<32x128xf32>
    %cst = arith.constant dense<0.000000e+00> : vector<8x128xf32>
    %2 = tpu.matmul %0, %1, %cst {dimension_numbers = #tpu.dot_dimension_numbers<[1], [0], [0], [1], [0, 0, 1, 1], [], []>} : vector<8x32xf32>, vector<32x128xf32>, vector<8x128xf32> -> vector<8x128xf32>
    %c0_3 = arith.constant 0 : index
    %c0_4 = arith.constant 0 : index
    %3 = vector.load %arg4[%c0_3, %c0_4] : memref<2x128xf32, #tpu.memory_space<vmem>>, vector<1x128xf32>
    %4 = vector.broadcast %3 : vector<1x128xf32> to vector<8x128xf32>
    %5 = arith.addf %2, %4 : vector<8x128xf32>
    %cst_5 = arith.constant 0.000000e+00 : f32
    %6 = vector.broadcast %cst_5 : f32 to vector<8x128xf32>
    %7 = arith.maximumf %5, %6 : vector<8x128xf32>
    %c0_6 = arith.constant 0 : index
    %c0_7 = arith.constant 0 : index
    %8 = vector.load %arg3[%c0_6, %c0_7] : memref<128x128xf32, #tpu.memory_space<vmem>>, vector<128x128xf32>
    %cst_8 = arith.constant dense<0.000000e+00> : vector<8x128xf32>
    %9 = tpu.matmul %7, %8, %cst_8 {dimension_numbers = #tpu.dot_dimension_numbers<[1], [0], [0], [1], [0, 0, 1, 1], [], []>} : vector<8x128xf32>, vector<128x128xf32>, vector<8x128xf32> -> vector<8x128xf32>
    %c1 = arith.constant 1 : index
    %c0_9 = arith.constant 0 : index
    %10 = vector.load %arg4[%c1, %c0_9] : memref<2x128xf32, #tpu.memory_space<vmem>>, vector<1x128xf32>
    %11 = vector.broadcast %10 : vector<1x128xf32> to vector<8x128xf32>
    %12 = arith.addf %9, %11 : vector<8x128xf32>
    %c0_10 = arith.constant 0 : index
    %c0_11 = arith.constant 0 : index
    %13 = vector.load %arg5[%c0_10, %c0_11] : memref<8x128xf32, #tpu.memory_space<vmem>>, vector<8x128xf32>
    tpu.vector_store %arg5[%c0_10, %c0_11], %12 {strides = array<i32>} : memref<8x128xf32, #tpu.memory_space<vmem>>, vector<8x128xf32>,
    return
  }
  func.func @transform_0(%arg0: i32) -> (i32, i32) {
    %c0_i32 = arith.constant 0 : i32
    %c0_i32_0 = arith.constant 0 : i32
    return %arg0, %c0_i32 : i32, i32
  }
  func.func @transform_1(%arg0: i32) -> (i32, i32) {
    %c0_i32 = arith.constant 0 : i32
    %c0_i32_0 = arith.constant 0 : i32
    %c0_i32_1 = arith.constant 0 : i32
    return %c0_i32, %c0_i32_0 : i32, i32
  }
  func.func @transform_2(%arg0: i32) -> (i32, i32) {
    %c0_i32 = arith.constant 0 : i32
    %c0_i32_0 = arith.constant 0 : i32
    %c0_i32_1 = arith.constant 0 : i32
    return %c0_i32, %c0_i32_0 : i32, i32
  }
  func.func @transform_3(%arg0: i32) -> (i32, i32) {
    %c0_i32 = arith.constant 0 : i32
    %c0_i32_0 = arith.constant 0 : i32
    %c0_i32_1 = arith.constant 0 : i32
    return %c0_i32, %c0_i32_0 : i32, i32
  }
  func.func @transform_4(%arg0: i32) -> (i32, i32) {
    %c0_i32 = arith.constant 0 : i32
    %c0_i32_0 = arith.constant 0 : i32
    return %arg0, %c0_i32 : i32, i32
  }
}

</mosaic_0001>

<bundles_post_ra>
// kernel: tpu_custom_call.1
= control target key start
LH: loop header
LB: loop body
LE: loop exit
PB: predicated region body
PF: predicated region fallthrough
CT: control target
= control target key end

     0   :  { %9 = vsyncpa [#allocation3], 0  ;;  %s548_s0 = inlined_call_operand.hbm [shape: f32[8,32], index: 0, kind: input, shape index: {}]   ;;  %s549_s1 = inlined_call_operand.hbm [shape: f32[32,128], index: 1, kind: input, shape index: {}]   ;;  %s550_s2 = inlined_call_operand.hbm [shape: f32[128,128], index: 2, kind: input, shape index: {}]   ;;  %s551_s3 = inlined_call_operand.vmem [shape: f32[2,128], index: 3, kind: input, shape index: {}]   ;;  %s552_s4 = inlined_call_operand.hbm [shape: f32[8,128], index: 4, kind: output, shape index: {}]  }
   0x1   :  { %10 = vsyncpa [#allocation6], 0 }
   0x2   :  { %11 = vsyncpa [#allocation4], 0  ;;  %s454_s15 = smov [#allocation5]   ;;  %s360_s19 = scalar_lea.hbm %s549_s1, 512 }
   0x3   :  { %s27_s16 = sshll.u32 %s454_s15, 4  ;;  %p361_p0 = scmp.ne.s32.totalorder %s549_s1, %s360_s19  ;;  %s28_s16 = int_to_ptr.vmem [resolvable:$true] %s27_s16 }
   0x4   :  { %p364_p1 = scmp.lt.u32.totalorder %s360_s19, %s549_s1 }
   0x6   :  { %p366_p2 = pnand %p364_p1, %p361_p0 }
   0x8   :  { %369 = shalt.err (!%p366_p2)
}
   0x9   :  { %s370_s24 = scalar_lea.vmem %s28_s16, 512  ;;  %p375_p4 = scmp.lt.s32.totalorder %s28_s16, %s28_s16 }
   0xa   :  { %p371_p3 = scmp.ne.s32.totalorder %s28_s16, %s370_s24  ;;  %p376_p5 = scmp.lt.s32.totalorder %s370_s24, %s370_s24 }
   0xc   :  { %p377_p6 = por %p376_p5, %p375_p4 }
   0xe   :  { %p378_p7 = pnand %p377_p6, %p371_p3 }
  0x10   :  { %381 = shalt.err (!%p378_p7)
}
  0x11   :  { %s455_s25 = smov 128   ;;  %s456_s26 = smov 8  }
  0x12   :  { %33 = dma.hbm_to_vmem [thread:$0]  %s549_s1, 512, %s28_s16, [#allocation6], %s455_s25, %s455_s25, %s456_s26  }
  0x13   :  { %s457_s29 = smov [#allocation2]   ;;  %s458_s5 = smov [#allocation7]  }
  0x14   :  { %s18_s30 = sshll.u32 %s457_s29, 4  ;;  %s39_s6 = sshll.u32 %s458_s5, 4  ;;  %s19_s30 = int_to_ptr.vmem [resolvable:$true] %s18_s30  ;;  %s40_s6 = int_to_ptr.vmem [resolvable:$true] %s39_s6 }
  0x15   :  { %s382_s9 = scalar_lea.hbm %s548_s0, 128 }
  0x16   :  { %p383_p8 = scmp.ne.s32.totalorder %s548_s0, %s382_s9  ;;  %p386_p9 = scmp.lt.u32.totalorder %s382_s9, %s548_s0 }
  0x18   :  { %p388_p10 = pnand %p386_p9, %p383_p8 }
  0x1a   :  { %391 = shalt.err (!%p388_p10)
}
  0x1b   :  { %s392_s1 = scalar_lea.vmem %s19_s30, 128  ;;  %p397_p12 = scmp.lt.s32.totalorder %s19_s30, %s19_s30 }
  0x1c   :  { %p393_p11 = scmp.ne.s32.totalorder %s19_s30, %s392_s1  ;;  %p398_p13 = scmp.lt.s32.totalorder %s392_s1, %s392_s1 }
  0x1e   :  { %p399_p0 = por %p398_p13, %p397_p12 }
  0x20   :  { %p400_p1 = pnand %p399_p0, %p393_p11 }
  0x22   :  { %403 = shalt.err (!%p400_p1)
}
  0x23   :  { %21 = dma.hbm_to_vmem [thread:$0]  %s548_s0, 128, %s19_s30, [#allocation3]  }
  0x24   :  { %s404_s18 = scalar_lea.hbm %s550_s2, 2048 }
  0x25   :  { %p405_p2 = scmp.ne.s32.totalorder %s550_s2, %s404_s18  ;;  %p408_p3 = scmp.lt.u32.totalorder %s404_s18, %s550_s2 }
  0x27   :  { %p410_p4 = pnand %p408_p3, %p405_p2 }
  0x29   :  { %413 = shalt.err (!%p410_p4)
}
  0x2a   :  { %s414_s23 = scalar_lea.vmem %s40_s6, 2048  ;;  %p419_p6 = scmp.lt.s32.totalorder %s40_s6, %s40_s6 }
  0x2b   :  { %p415_p5 = scmp.ne.s32.totalorder %s40_s6, %s414_s23  ;;  %p420_p7 = scmp.lt.s32.totalorder %s414_s23, %s414_s23 }
  0x2d   :  { %p421_p8 = por %p420_p7, %p419_p6 }
  0x2f   :  { %p422_p9 = pnand %p421_p8, %p415_p5 }
  0x31   :  { %425 = shalt.err (!%p422_p9)
}
  0x32   :  { %45 = dma.hbm_to_vmem [thread:$0]  %s550_s2, 2048, %s40_s6, [#allocation6], %s455_s25, %s455_s25, %s456_s26  }
  0x33   :  { %448 = dma.done.wait [#allocation3], 128  }
  0x34   :  { %449 = vsyncadd [#allocation3], 4294967168 }
  0x35   :  { %450 = dma.done.wait [#allocation6], 2560  }
  0x36   :  { %451 = vsyncadd [#allocation6], 4294964736  ;;  %v459_v0 = vmov 0.0|0.0   ;;  %vm460_vm0 = vmmov 0   ;;  %v461_v1 = vmov 0.0   ;;  %v58_v2 = vld [vmem:[#allocation5] sm:$0xff] }
  0x37   :  { %321 = vmatprep.subr.bf16.mxu0 %v459_v0  ;;  %283 = vmatprep.mubr.msk.f32.mxu0 %vm460_vm0, %v461_v1  ;;  %v59_v3 = vld [vmem:[#allocation5 + $0x8] sm:$0xff]  ;;  %v60_v4 = vld [vmem:[#allocation5 + $0x10] sm:$0xff]  ;;  %v61_v6 = vld [vmem:[#allocation5 + $0x18] sm:$0xff]  ;;  %vm67_vm1 = vcmask 261120   ;;  %s462_s28 = smov [#allocation8]  }
  0x38   :  { %327 = vmatprep.subr.bf16.mxu1 %v459_v0  ;;  %318 = vmatprep.mubr.msk.f32.mxu1 %vm460_vm0, %v461_v1  ;;  %v322_v5 = vpack.c.bf16 %v59_v3, %v58_v2  ;;  %v142_v7 = vld [vmem:[#allocation7] sm:$0xff]  ;;  %v143_v8 = vld [vmem:[#allocation7 + $0x8] sm:$0xff]  ;;  %v144_v9 = vld [vmem:[#allocation7 + $0x10] sm:$0xff]  ;;  %v325_v11 = vpack.c.bf16 %v61_v6, %v60_v4  ;;  %s240_s29 = sshll.u32 %s462_s28, 4  ;;  %s241_s29 = int_to_ptr.vmem [resolvable:$true] %s240_s29 }
  0x39   :  { %v145_v10 = vld [vmem:[#allocation7 + $0x18] sm:$0xff]  ;;  %v328_v12 = vpack.c.bf16 %v143_v8, %v142_v7  ;;  %v146_v14 = vld [vmem:[#allocation7 + $0x20] sm:$0xff]  ;;  %v147_v15 = vld [vmem:[#allocation7 + $0x28] sm:$0xff]  ;;  %s426_s30 = scalar_lea.vmem %s241_s29, 128  ;;  %p431_p11 = scmp.lt.s32.totalorder %s241_s29, %s241_s29 }
  0x3a   :  { %323 = vmatpush3.bf16.msra.mxu0 %v322_v5  ;;  %v331_v13 = vpack.c.bf16 %v145_v10, %v144_v9  ;;  %v57_v16 = vld [vmem:[#allocation2] sm:$0xff]  ;;  %v334_v17 = vpack.c.bf16 %v147_v15, %v146_v14  ;;  %v148_v18 = vld [vmem:[#allocation7 + $0x30] sm:$0xff]  ;;  %v150_v21 = vld [vmem:[#allocation7 + $0x40] sm:$0xff]  ;;  %p427_p10 = scmp.ne.s32.totalorder %s241_s29, %s426_s30  ;;  %p432_p12 = scmp.lt.s32.totalorder %s426_s30, %s426_s30 }
  0x3b   :  { %324 = vmatprep.subr.bf16.mxu0 %v459_v0  ;;  %329 = vmatpush3.bf16.msra.mxu1 %v328_v12  ;;  %v149_v19 = vld [vmem:[#allocation7 + $0x38] sm:$0xff]  ;;  %v151_v22 = vld [vmem:[#allocation7 + $0x48] sm:$0xff]  ;;  %v152_v24 = vld [vmem:[#allocation7 + $0x50] sm:$0xff] }
  0x3c   :  { %330 = vmatprep.subr.bf16.mxu1 %v459_v0  ;;  %v337_v20 = vpack.c.bf16 %v149_v19, %v148_v18  ;;  %v340_v23 = vpack.c.bf16 %v151_v22, %v150_v21  ;;  %v153_v25 = vld [vmem:[#allocation7 + $0x58] sm:$0xff]  ;;  %v154_v27 = vld [vmem:[#allocation7 + $0x60] sm:$0xff]  ;;  %v155_v28 = vld [vmem:[#allocation7 + $0x68] sm:$0xff]  ;;  %p433_p13 = por %p432_p12, %p431_p11 }
  0x3d   :  { %v343_v26 = vpack.c.bf16 %v153_v25, %v152_v24  ;;  %v346_v29 = vpack.c.bf16 %v155_v28, %v154_v27  ;;  %v156_v30 = vld [vmem:[#allocation7 + $0x70] sm:$0xff]  ;;  %v157_v31 = vld [vmem:[#allocation7 + $0x78] sm:$0xff] }
  0x3e   :  { %326 = vmatpush3.bf16.msra.mxu0 %v325_v11  ;;  %v349_v32 = vpack.c.bf16 %v157_v31, %v156_v30  ;;  %v250_v33 = vld [vmem:[%s551_s3] ss:$0 sm:$0xff]  ;;  %v252_v38 = vld [vmem:[%s551_s3 + $0x1] ss:$0 sm:$0xff]  ;;  %p434_p0 = pnand %p433_p13, %p427_p10 }
  0x3f   :  { %332 = vmatpush3.bf16.msra.mxu1 %v331_v13 }
  0x40   :  { %333 = vmatprep.subr.bf16.mxu1 %v459_v0 }
  0x41   :  { %284 = vmatmul.mubr.msk.f32.vlgmr.msra.gmra.mrb[0].mxu0 %vm67_vm1, %v57_v16 }
  0x43   :  { %335 = vmatpush3.bf16.msra.mxu1 %v334_v17 }
  0x44   :  { %336 = vmatprep.subr.bf16.mxu1 %v459_v0 }
  0x47   :  { %338 = vmatpush3.bf16.msra.mxu1 %v337_v20 }
  0x48   :  { %339 = vmatprep.subr.bf16.mxu1 %v459_v0 }
  0x4b   :  { %341 = vmatpush3.bf16.msra.mxu1 %v340_v23 }
  0x4c   :  { %342 = vmatprep.subr.bf16.mxu1 %v459_v0 }
  0x4f   :  { %344 = vmatpush3.bf16.msra.mxu1 %v343_v26 }
  0x50   :  { %345 = vmatprep.subr.bf16.mxu1 %v459_v0 }
  0x53   :  { %347 = vmatpush3.bf16.msra.mxu1 %v346_v29 }
  0x54   :  { %348 = vmatprep.subr.bf16.mxu1 %v459_v0 }
  0x57   :  { %350 = vmatpush3.bf16.msra.mxu1 %v349_v32 }
 0x114   :  { %v137_v34 = vpop.f32.mrb[0].mxu0 }
 0x115   :  { %v138_v35 = vadd.f32 %v250_v33, %v137_v34  ;;  %v285_v36 = vpop.f32.mrb[1].mxu0 }
 0x117   :  { %v141_v37 = vmax.f32 %v138_v35, 0.0 }
 0x119   :  { %319 = vmatmul.mubr.f32.vlgmr.msra.gmra.mrb[0].mxu1 %v141_v37 }
 0x1ec   :  { %v229_v39 = vpop.f32.mrb[0].mxu1 }
 0x1ed   :  { %v230_v40 = vadd.f32 %v252_v38, %v229_v39  ;;  %v320_v41 = vpop.f32.mrb[1].mxu1 }
 0x1ef   :  { %233 = vst [vmem:[#allocation8] sm:$0xff] %v230_v40 }
 0x1f0   :  { %437 = shalt.err (!%p434_p0)
}
 0x1f1   :  { %s438_s7 = scalar_lea.hbm %s552_s4, 128 }
 0x1f2   :  { %p439_p1 = scmp.ne.s32.totalorder %s552_s4, %s438_s7  ;;  %p442_p2 = scmp.lt.u32.totalorder %s438_s7, %s552_s4 }
 0x1f4   :  { %p444_p3 = pnand %p442_p2, %p439_p1 }
 0x1f6   :  { %447 = shalt.err (!%p444_p3)
}
 0x1f7   :  { %243 = dma.vmem_to_hbm [thread:$0]  %s241_s29, 128, %s552_s4, [#allocation4]  }
 0x1f8   :  { %452 = dma.done.wait [#allocation4], 128  }
 0x1f9   :  { %453 = vsyncadd [#allocation4], 4294967168 }
 0x1fa   :  { %247 = vsyncpa [#allocation3], 1 }
 0x1fb   :  { %248 = vsyncpa [#allocation6], 1 }
 0x1fc   :  { %249 = vsyncpa [#allocation4], 1 }

</bundles_post_ra>
